<compile_context>
chip_gen: v7x
topology: tpu7x:2x2x1
jax: 0.10.0
libtpu: 0.0.40
codegen_flags: <defaults>
</compile_context>

<pallas_src>
import jax
import jax.numpy as jnp
import numpy as np
from jax.experimental import pallas as pl
from jax.experimental.pallas import tpu as pltpu


# ------------------------- config helpers -------------------------

_LANE = 128
# Above the 16/32 MiB scoped defaults, below v7x's 64 MiB physical VMEM.
_VMEM_LIMIT_BYTES = 48 * 1024 * 1024


def _compiler_params(n_axes=1):
    return pltpu.CompilerParams(
        dimension_semantics=("parallel",) * n_axes,
        vmem_limit_bytes=_VMEM_LIMIT_BYTES)


def _rup(n, m=_LANE):
    return -(-n // m) * m


def _pad_last(a, target):
    pad = target - a.shape[-1]
    if pad == 0:
        return a
    cfg = [(0, 0)] * (a.ndim - 1) + [(0, pad)]
    return jnp.pad(a, cfg)


def _pad_mat(w, rows, cols):
    return jnp.pad(w, ((0, rows - w.shape[0]), (0, cols - w.shape[1])))


def _pick_tm(M, target=512):
    """Largest row tile <= target that divides M, multiple of 8, leaving >=2 grid
    steps where possible (keeps both v7x TensorCores busy)."""
    cap = min(target, M)
    if M >= 16:
        cap = min(cap, max(8, M // 2))
    for t in range(cap, 7, -1):
        if M % t == 0 and t % 8 == 0:
            return t
    return M  # full extent (block == array dim is always legal)


# ------------------------- Pallas kernels -------------------------

def _bn_mm_bn_kernel(x_ref, si_ref, bi_ref, w_ref, so_ref, bo_ref, o_ref):
    # prologue: y = relu(x*scale_in + bias_in); matmul; epilogue: relu(.*scale_out + bias_out)
    xr = jnp.maximum(x_ref[...] * si_ref[...] + bi_ref[...], 0.0)
    acc = jnp.dot(xr, w_ref[...], preferred_element_type=jnp.float32)
    o_ref[...] = jnp.maximum(acc * so_ref[...] + bo_ref[...], 0.0).astype(o_ref.dtype)


def _bn_mm_kernel(x_ref, si_ref, bi_ref, w_ref, o_ref):
    xr = jnp.maximum(x_ref[...] * si_ref[...] + bi_ref[...], 0.0)
    o_ref[...] = jnp.dot(xr, w_ref[...],
                         preferred_element_type=jnp.float32).astype(o_ref.dtype)


def _mm_add_kernel(x_ref, w_ref, r_ref, o_ref):
    acc = jnp.dot(x_ref[...], w_ref[...], preferred_element_type=jnp.float32)
    o_ref[...] = (acc + r_ref[...]).astype(o_ref.dtype)


# ------------------------- wrappers -------------------------------

def bn_mm_bn(x2d, s_in, b_in, w, s_out, b_out, tm_target=512):
    M, K = x2d.shape
    Nout = w.shape[1]
    tm = _pick_tm(M, tm_target)
    return pl.pallas_call(
        _bn_mm_bn_kernel,
        out_shape=jax.ShapeDtypeStruct((M, Nout), jnp.float32),
        grid=(M // tm,),
        in_specs=[pl.BlockSpec((tm, K), lambda i: (i, 0)),
                  pl.BlockSpec((1, K), lambda i: (0, 0)),
                  pl.BlockSpec((1, K), lambda i: (0, 0)),
                  pl.BlockSpec((K, Nout), lambda i: (0, 0)),
                  pl.BlockSpec((1, Nout), lambda i: (0, 0)),
                  pl.BlockSpec((1, Nout), lambda i: (0, 0))],
        out_specs=pl.BlockSpec((tm, Nout), lambda i: (i, 0)),
        compiler_params=_compiler_params(),
    )(x2d, s_in.reshape(1, K), b_in.reshape(1, K), w,
      s_out.reshape(1, Nout), b_out.reshape(1, Nout))


def bn_mm(x2d, s_in, b_in, w, tm_target=512):
    M, K = x2d.shape
    Nout = w.shape[1]
    tm = _pick_tm(M, tm_target)
    return pl.pallas_call(
        _bn_mm_kernel,
        out_shape=jax.ShapeDtypeStruct((M, Nout), jnp.float32),
        grid=(M // tm,),
        in_specs=[pl.BlockSpec((tm, K), lambda i: (i, 0)),
                  pl.BlockSpec((1, K), lambda i: (0, 0)),
                  pl.BlockSpec((1, K), lambda i: (0, 0)),
                  pl.BlockSpec((K, Nout), lambda i: (0, 0))],
        out_specs=pl.BlockSpec((tm, Nout), lambda i: (i, 0)),
        compiler_params=_compiler_params(),
    )(x2d, s_in.reshape(1, K), b_in.reshape(1, K), w)


def mm_add(x2d, w, residual, tm_target=512):
    M, K = x2d.shape
    Nout = w.shape[1]
    tm = _pick_tm(M, tm_target)
    return pl.pallas_call(
        _mm_add_kernel,
        out_shape=jax.ShapeDtypeStruct((M, Nout), jnp.float32),
        grid=(M // tm,),
        in_specs=[pl.BlockSpec((tm, K), lambda i: (i, 0)),
                  pl.BlockSpec((K, Nout), lambda i: (0, 0)),
                  pl.BlockSpec((tm, Nout), lambda i: (i, 0))],
        out_specs=pl.BlockSpec((tm, Nout), lambda i: (i, 0)),
        compiler_params=_compiler_params(),
    )(x2d, w, residual)


def conv3x3_bn_relu(a_nhwc, w9, scale_out, bias_out, stride):
    """3x3 conv (padding=1, given stride) on post-activation input `a_nhwc`,
    fused with a relu(bn) output epilogue.

    The padded input is space-to-depth'd by `stride` once in glue so that every
    one of the 9 taps becomes a contiguous window of a per-image VMEM slab; the
    kernel accumulates the 9 tap matmuls without ever materialising an im2col
    array in HBM.
    Returns (flattened (N*Ho*Wo, Cout) output, Ho, Wo)."""
    N, H, W, C = a_nhwc.shape
    s = stride
    Ho = (H - 1) // s + 1
    Wo = (W - 1) // s + 1
    Hp_r = _rup(H + 2, s)
    Wp_r = _rup(W + 2, s)
    # zero padding is applied to the *post*-BN/ReLU activation, matching F.conv2d(pad=1)
    xp = jnp.pad(a_nhwc, ((0, 0), (1, Hp_r - H - 1), (1, Wp_r - W - 1), (0, 0)))
    Hs, Ws = Hp_r // s, Wp_r // s
    xs = (xp.reshape(N, Hs, s, Ws, s, C)
            .transpose(0, 1, 3, 2, 4, 5)
            .reshape(N, Hs, Ws, s * s * C))
    Cout = w9.shape[2]

    def kernel(x_ref, w_ref, sc_ref, bi_ref, o_ref):
        acc = jnp.zeros((Ho * Wo, Cout), jnp.float32)
        for kh in range(3):
            for kw in range(3):
                dh, ph = divmod(kh, s)
                dw, pw = divmod(kw, s)
                cb = ph * s + pw
                tap = x_ref[0, dh:dh + Ho, dw:dw + Wo, cb * C:(cb + 1) * C]
                acc = acc + jnp.dot(tap.reshape(Ho * Wo, C), w_ref[kh * 3 + kw],
                                    preferred_element_type=jnp.float32)
        y = jnp.maximum(acc * sc_ref[...] + bi_ref[...], 0.0)
        o_ref[0] = y.astype(o_ref.dtype)

    out = pl.pallas_call(
        kernel,
        out_shape=jax.ShapeDtypeStruct((N, Ho * Wo, Cout), jnp.float32),
        grid=(N,),
        in_specs=[pl.BlockSpec((1, Hs, Ws, s * s * C), lambda n: (n, 0, 0, 0)),
                  pl.BlockSpec((9, C, Cout), lambda n: (0, 0, 0)),
                  pl.BlockSpec((1, Cout), lambda n: (0, 0)),
                  pl.BlockSpec((1, Cout), lambda n: (0, 0))],
        out_specs=pl.BlockSpec((1, Ho * Wo, Cout), lambda n: (n, 0, 0)),
        compiler_params=_compiler_params(),
    )(xs, w9, scale_out.reshape(1, Cout), bias_out.reshape(1, Cout))
    return out.reshape(N * Ho * Wo, Cout), Ho, Wo


# ------------------------- glue ------------------------------------

def _fold_bn(bn_params, eps=1e-5):
    gamma, beta, mean, var = bn_params
    scale = gamma / jnp.sqrt(var + eps)
    bias = beta - mean * scale
    return scale, bias


# ------------------------- module forward --------------------------

def preact_bottleneck_forward(x_nchw, params, stride):
    N, Cin, H, W = x_nchw.shape
    planes = params["conv1"].shape[0]
    cout = params["conv3"].shape[0]               # expansion * planes

    Cin_p = _rup(Cin)
    P_p = _rup(planes)
    Co_p = _rup(cout)

    # NCHW -> NHWC, channels zero-padded to a lane multiple (padded lanes stay 0
    # through every fused stage: scale/bias/weight padding is all zeros).
    x = jnp.transpose(x_nchw, (0, 2, 3, 1))
    x = _pad_last(x, Cin_p)
    x2d = x.reshape(N * H * W, Cin_p)

    s1, b1 = _fold_bn(params["bn1"])
    s2, b2 = _fold_bn(params["bn2"])
    s3, b3 = _fold_bn(params["bn3"])
    s1, b1 = _pad_last(s1, Cin_p), _pad_last(b1, Cin_p)
    s2, b2 = _pad_last(s2, P_p), _pad_last(b2, P_p)
    s3, b3 = _pad_last(s3, P_p), _pad_last(b3, P_p)

    w1 = _pad_mat(params["conv1"][:, :, 0, 0].T, Cin_p, P_p)          # (Cin_p, P_p)
    w2 = jnp.transpose(params["conv2"], (2, 3, 1, 0)).reshape(9, planes, planes)
    w2 = jnp.pad(w2, ((0, 0), (0, P_p - planes), (0, P_p - planes)))  # (9, P_p, P_p)
    w3 = _pad_mat(params["conv3"][:, :, 0, 0].T, P_p, Co_p)           # (P_p, Co_p)

    # Stage A: relu(bn1) -> conv1 -> relu(bn2)   (single HBM pass of the activation)
    a1 = bn_mm_bn(x2d, s1, b1, w1, s2, b2)                            # (N*H*W, P_p)

    # Stage S: shortcut
    if "shortcut" in params:
        w_sc = _pad_mat(params["shortcut"][:, :, 0, 0].T, Cin_p, Co_p)
        xs = x[:, ::stride, ::stride, :]          # 1x1 strided conv input subsample
        Hs_, Ws_ = xs.shape[1], xs.shape[2]
        shortcut = bn_mm(xs.reshape(N * Hs_ * Ws_, Cin_p), s1, b1, w_sc)
    else:
        shortcut = x2d                            # identity: raw x (Cin_p == Co_p here)

    # Stage B: 3x3 stride conv with relu(bn3) epilogue (in-kernel 9-tap accumulation)
    a2, Ho, Wo = conv3x3_bn_relu(a1.reshape(N, H, W, P_p), w2, s3, b3, stride)

    # Stage C: conv3 (1x1) + residual add
    out = mm_add(a2, w3, shortcut)                                    # (N*Ho*Wo, Co_p)

    out = out.reshape(N, Ho, Wo, Co_p)[..., :cout]
    return jnp.transpose(out, (0, 3, 1, 2))                           # NHWC -> NCHW


# ------------------------- deterministic params ---------------------

def init_params(key, in_planes, planes, stride, expansion=4):
    ks = jax.random.split(key, 16)

    def bn(kg, kb, km, kv, c):
        gamma = jax.random.uniform(kg, (c,), jnp.float32, 0.5, 1.5)
        beta = 0.1 * jax.random.normal(kb, (c,), jnp.float32)
        mean = 0.1 * jax.random.normal(km, (c,), jnp.float32)
        var = jax.random.uniform(kv, (c,), jnp.float32, 0.5, 1.5)
        return gamma, beta, mean, var

    params = {
        "bn1": bn(ks[0], ks[1], ks[2], ks[3], in_planes),
        "bn2": bn(ks[4], ks[5], ks[6], ks[7], planes),
        "bn3": bn(ks[8], ks[9], ks[10], ks[11], planes),
        # PyTorch conv weight layout: (Cout, Cin, kh, kw), no bias
        "conv1": 0.2 * jax.random.normal(ks[12], (planes, in_planes, 1, 1), jnp.float32),
        "conv2": 0.2 * jax.random.normal(ks[13], (planes, planes, 3, 3), jnp.float32),
        "conv3": 0.2 * jax.random.normal(ks[14], (expansion * planes, planes, 1, 1), jnp.float32),
    }
    if stride != 1 or in_planes != expansion * planes:
        params["shortcut"] = 0.2 * jax.random.normal(
            ks[15], (expansion * planes, in_planes, 1, 1), jnp.float32)
    return params


# ------------------------- pure-JAX reference -----------------------

def reference_forward(x_nchw, params, stride, eps=1e-5):
    def bn(x, p):
        gamma, beta, mean, var = p
        inv = (gamma / jnp.sqrt(var + eps))[None, :, None, None]
        return (x - mean[None, :, None, None]) * inv + beta[None, :, None, None]

    def conv(x, w, s=1, p=0):
        return jax.lax.conv_general_dilated(
            x, w, (s, s), [(p, p), (p, p)],
            dimension_numbers=("NCHW", "OIHW", "NCHW"))

    out = jax.nn.relu(bn(x_nchw, params["bn1"]))
    shortcut = (conv(out, params["shortcut"], s=stride)
                if "shortcut" in params else x_nchw)
    out = conv(out, params["conv1"])
    out = conv(jax.nn.relu(bn(out, params["bn2"])), params["conv2"], s=stride, p=1)
    out = conv(jax.nn.relu(bn(out, params["bn3"])), params["conv3"])
    return out + shortcut


if __name__ == "__main__":
    key = jax.random.PRNGKey(0)
    configs = [
        # (N, in_planes, planes, stride, H) : projection shortcut + strided 3x3
        (2, 16, 8, 2, 16),
        # identity shortcut + stride-1 3x3
        (2, 32, 8, 1, 16),
    ]
    for (N, in_planes, planes, stride, H) in configs:
        k_x, k_p, key = jax.random.split(key, 3)
        x = jax.random.normal(k_x, (N, in_planes, H, H), jnp.float32)  # NCHW, like PyTorch
        params = init_params(k_p, in_planes, planes, stride)

        out = jax.block_until_ready(preact_bottleneck_forward(x, params, stride))
        assert out.shape == (N, 4 * planes, H // stride, H // stride), out.shape

        ref = reference_forward(x, params, stride)
        np.testing.assert_allclose(np.asarray(out), np.asarray(ref), atol=1e-4, rtol=1e-4)

    print("KERNEL_OK")
</pallas_src>

<mosaic_0001>
module attributes {stable_mosaic.version = 11 : i64} {
  func.func @_bn_mm_bn_kernel(%arg0: i32, %arg1: memref<256x128xf32, #tpu.memory_space<vmem>>, %arg2: memref<1x128xf32, #tpu.memory_space<vmem>>, %arg3: memref<1x128xf32, #tpu.memory_space<vmem>>, %arg4: memref<128x128xf32, #tpu.memory_space<vmem>>, %arg5: memref<1x128xf32, #tpu.memory_space<vmem>>, %arg6: memref<1x128xf32, #tpu.memory_space<vmem>>, %arg7: memref<256x128xf32, #tpu.memory_space<vmem>>) attributes {dimension_semantics = [#tpu.dimension_semantics<parallel>], iteration_bounds = array<i64: 2>, scalar_prefetch = 0 : i64, scratch_operands = 0 : i64, tpu.core_type = #tpu.core_type<tc>, window_params = [{transform_indices = @transform_0, window_bounds = array<i64: 256, 128>}, {pipeline_mode = #tpu.pipeline_mode<synchronous>, transform_indices = @transform_1, window_bounds = array<i64: 1, 128>}, {pipeline_mode = #tpu.pipeline_mode<synchronous>, transform_indices = @transform_2, window_bounds = array<i64: 1, 128>}, {pipeline_mode = #tpu.pipeline_mode<synchronous>, transform_indices = @transform_3, window_bounds = array<i64: 128, 128>}, {pipeline_mode = #tpu.pipeline_mode<synchronous>, transform_indices = @transform_4, window_bounds = array<i64: 1, 128>}, {pipeline_mode = #tpu.pipeline_mode<synchronous>, transform_indices = @transform_5, window_bounds = array<i64: 1, 128>}, {transform_indices = @transform_6, window_bounds = array<i64: 256, 128>}]} {
    %c0 = arith.constant 0 : index
    %c0_0 = arith.constant 0 : index
    %0 = vector.load %arg1[%c0, %c0_0] : memref<256x128xf32, #tpu.memory_space<vmem>>, vector<256x128xf32>
    %c0_1 = arith.constant 0 : index
    %c0_2 = arith.constant 0 : index
    %1 = vector.load %arg2[%c0_1, %c0_2] : memref<1x128xf32, #tpu.memory_space<vmem>>, vector<1x128xf32>
    %2 = vector.broadcast %1 : vector<1x128xf32> to vector<256x128xf32>
    %3 = arith.mulf %0, %2 : vector<256x128xf32>
    %c0_3 = arith.constant 0 : index
    %c0_4 = arith.constant 0 : index
    %4 = vector.load %arg3[%c0_3, %c0_4] : memref<1x128xf32, #tpu.memory_space<vmem>>, vector<1x128xf32>
    %5 = vector.broadcast %4 : vector<1x128xf32> to vector<256x128xf32>
    %6 = arith.addf %3, %5 : vector<256x128xf32>
    %cst = arith.constant 0.000000e+00 : f32
    %7 = vector.broadcast %cst : f32 to vector<256x128xf32>
    %8 = arith.maximumf %6, %7 : vector<256x128xf32>
    %c0_5 = arith.constant 0 : index
    %c0_6 = arith.constant 0 : index
    %9 = vector.load %arg4[%c0_5, %c0_6] : memref<128x128xf32, #tpu.memory_space<vmem>>, vector<128x128xf32>
    %cst_7 = arith.constant dense<0.000000e+00> : vector<256x128xf32>
    %10 = tpu.matmul %8, %9, %cst_7 {dimension_numbers = #tpu.dot_dimension_numbers<[1], [0], [0], [1], [0, 0, 1, 1], [], []>} : vector<256x128xf32>, vector<128x128xf32>, vector<256x128xf32> -> vector<256x128xf32>
    %c0_8 = arith.constant 0 : index
    %c0_9 = arith.constant 0 : index
    %11 = vector.load %arg5[%c0_8, %c0_9] : memref<1x128xf32, #tpu.memory_space<vmem>>, vector<1x128xf32>
    %12 = vector.broadcast %11 : vector<1x128xf32> to vector<256x128xf32>
    %13 = arith.mulf %10, %12 : vector<256x128xf32>
    %c0_10 = arith.constant 0 : index
    %c0_11 = arith.constant 0 : index
    %14 = vector.load %arg6[%c0_10, %c0_11] : memref<1x128xf32, #tpu.memory_space<vmem>>, vector<1x128xf32>
    %15 = vector.broadcast %14 : vector<1x128xf32> to vector<256x128xf32>
    %16 = arith.addf %13, %15 : vector<256x128xf32>
    %cst_12 = arith.constant 0.000000e+00 : f32
    %17 = vector.broadcast %cst_12 : f32 to vector<256x128xf32>
    %18 = arith.maximumf %16, %17 : vector<256x128xf32>
    %c0_13 = arith.constant 0 : index
    %c0_14 = arith.constant 0 : index
    %19 = vector.load %arg7[%c0_13, %c0_14] : memref<256x128xf32, #tpu.memory_space<vmem>>, vector<256x128xf32>
    tpu.vector_store %arg7[%c0_13, %c0_14], %18 {strides = array<i32>} : memref<256x128xf32, #tpu.memory_space<vmem>>, vector<256x128xf32>,
    return
  }
  func.func @transform_0(%arg0: i32) -> (i32, i32) {
    %c0_i32 = arith.constant 0 : i32
    %c0_i32_0 = arith.constant 0 : i32
    return %arg0, %c0_i32 : i32, i32
  }
  func.func @transform_1(%arg0: i32) -> (i32, i32) {
    %c0_i32 = arith.constant 0 : i32
    %c0_i32_0 = arith.constant 0 : i32
    %c0_i32_1 = arith.constant 0 : i32
    return %c0_i32, %c0_i32_0 : i32, i32
  }
  func.func @transform_2(%arg0: i32) -> (i32, i32) {
    %c0_i32 = arith.constant 0 : i32
    %c0_i32_0 = arith.constant 0 : i32
    %c0_i32_1 = arith.constant 0 : i32
    return %c0_i32, %c0_i32_0 : i32, i32
  }
  func.func @transform_3(%arg0: i32) -> (i32, i32) {
    %c0_i32 = arith.constant 0 : i32
    %c0_i32_0 = arith.constant 0 : i32
    %c0_i32_1 = arith.constant 0 : i32
    return %c0_i32, %c0_i32_0 : i32, i32
  }
  func.func @transform_4(%arg0: i32) -> (i32, i32) {
    %c0_i32 = arith.constant 0 : i32
    %c0_i32_0 = arith.constant 0 : i32
    %c0_i32_1 = arith.constant 0 : i32
    return %c0_i32, %c0_i32_0 : i32, i32
  }
  func.func @transform_5(%arg0: i32) -> (i32, i32) {
    %c0_i32 = arith.constant 0 : i32
    %c0_i32_0 = arith.constant 0 : i32
    %c0_i32_1 = arith.constant 0 : i32
    return %c0_i32, %c0_i32_0 : i32, i32
  }
  func.func @transform_6(%arg0: i32) -> (i32, i32) {
    %c0_i32 = arith.constant 0 : i32
    %c0_i32_0 = arith.constant 0 : i32
    return %arg0, %c0_i32 : i32, i32
  }
}

</mosaic_0001>

<bundles_post_ra>
// kernel: tpu_custom_call.1
= control target key start
LH: loop header
LB: loop body
LE: loop exit
PB: predicated region body
PF: predicated region fallthrough
CT: control target
= control target key end

     0   :  { %11 = vsyncpa [#allocation3], 0  ;;  %s1768_s0 = inlined_call_operand.hbm [shape: f32[512,128], index: 0, kind: input, shape index: {}]   ;;  %s1769_s1 = inlined_call_operand.vmem [shape: f32[1,128], index: 1, kind: input, shape index: {}]   ;;  %s1770_s2 = inlined_call_operand.vmem [shape: f32[1,128], index: 2, kind: input, shape index: {}]   ;;  %s1771_s3 = inlined_call_operand.hbm [shape: f32[128,128], index: 3, kind: input, shape index: {}]   ;;  %s1772_s4 = inlined_call_operand.vmem [shape: f32[1,128], index: 4, kind: input, shape index: {}]   ;;  %s1773_s5 = inlined_call_operand.vmem [shape: f32[1,128], index: 5, kind: input, shape index: {}]   ;;  %s1774_s6 = inlined_call_operand.hbm [shape: f32[512,128], index: 6, kind: output, shape index: {}]  }
   0x1   :  { %13 = vsyncpa [#allocation3 + $0x1], 0 }
   0x2   :  { %14 = vsyncpa [#allocation6], 0 }
   0x3   :  { %15 = vsyncpa [#allocation4], 0 }
   0x4   :  { %17 = vsyncpa [#allocation4 + $0x1], 0  ;;  %s1340_s21 = smov 0   ;;  %s1342_s22 = smov 0  }
   0x5   :  { %s1344_s23 = smov 0   ;;  %s1346_s24 = smov 0  }
   0x6 LB: > { %s1361_s25 = sadd.s32 4294967295, %s1296_s24   ;;  %s909_s26 = sadd.s32 4294967294, %s1296_s24   ;;  %s1296_s24 = sphi %s1346_s24, %s1794_s24   ;;  %s1292_s23 = sphi %s1344_s23, %s1793_s23   ;;  %s1288_s22 = sphi %s1342_s22, %s1792_s22   ;;  %s1284_s21 = sphi %s1340_s21, %s1791_s21  }
   0x7   : > { %p43_p0 = scmp.ne.s32.totalorder %s1288_s22, %s1284_s21  ;;  %p1775_p1 = scmp.eq.s32.totalorder %s1361_s25, 0 }
   0x8   : > { %p178_p3 = scmp.eq.s32.totalorder %s909_s26, 1  ;;  %p910_p5 = scmp.ge.s32.totalorder %s1296_s24, 1 }
   0x9   : > { %p1370_p4 = por %p1775_p1, %p43_p0  ;;  %p185_p7 = scmp.lt.s32.totalorder %s1296_s24, 3 }
   0xa   : > { %p1375_p6 = por %p178_p3, %p43_p0  ;;  %s1298_s30 = smov [#allocation5]  }
   0xb   : > { %s1778_s27 = scalar_select %p1370_p4, 1, 0 }
   0xc   : > { %s1779_s28 = scalar_select %p1375_p6, 1, 0 }
   0xd   : > { %p1380_p8 = pnand %p910_p5, %p185_p7  ;;  %s203_s7 = sshll.u32 %s1298_s30, 4  ;;  %s1384_s7 = int_to_ptr.vmem [resolvable:$true] %s203_s7 }
   0xe   : > { %s1396_s9 = sadd.s32 1, %s1296_s24   ;;  %s30_s10 = sadd.s32 1, %s1292_s23 }
   0xf   : > { %s1780_s29 = scalar_select %p1380_p8, 1, 0 }
  0x10   : > { %p1115_p9 = pneg %p1380_p8  ;;  %s27_s11 = ssub.s32 %s1296_s24, %s1396_s9 }
  0x11   : > { %s1168_s14 = scalar_lea.hbm %s1771_s3, 2048 }
  0x12   : > { %p1391_p11 = pnand %p1115_p9, %p1775_p1  ;;  %p1169_p12 = scmp.ne.s32.totalorder %s1771_s3, %s1168_s14 }
  0x13   : > { %p1175_p5 = scmp.lt.u32.totalorder %s1168_s14, %s1771_s3 }
  0x14   : > { %p1170_p13 = pneg %p1391_p11 }
  0x16   : > { %p1171_p0 = pnand %p1170_p13, %p1169_p12 }
  0x18   : > { %p1172_p3 = pneg %p1171_p0 }
  0x1a   : > { %p1177_p7 = pnand %p1175_p5, %p1172_p3 }
  0x1c   : > { %1180 = shalt.err (!%p1177_p7)
}
  0x1d   : > { %s1181_s19 = scalar_lea.vmem %s1384_s7, 2048  ;;  %p1189_p2 = scmp.lt.s32.totalorder %s1384_s7, %s1384_s7 }
  0x1e   : > { %p1182_p9 = scmp.ne.s32.totalorder %s1384_s7, %s1181_s19  ;;  %p1190_p6 = scmp.lt.s32.totalorder %s1181_s19, %s1181_s19 }
  0x20   : > { %p1184_p10 = pnand %p1182_p9, %p1170_p13  ;;  %p1191_p4 = por %p1190_p6, %p1189_p2 }
  0x22   : > { %p1185_p1 = pneg %p1184_p10 }
  0x24   : > { %p1192_p8 = pnand %p1191_p4, %p1185_p1 }
  0x26   : > { %1195 = shalt.err (!%p1192_p8)
}
  0x27   : > { %s1299_s20 = smov 128   ;;  %s1300_s26 = smov 8  }
  0x28   : > { %1118 = dma.hbm_to_vmem [thread:$0]  (!%p1391_p11), %s1771_s3, 2048, %s1384_s7, [#allocation6], %s1299_s20, %s1299_s20, %s1300_s26  }
  0x29   : > { %p28_p1 = scmp.eq.s32.totalorder %s27_s11, 0  ;;  %p37_p2 = scmp.ne.s32.totalorder %s1292_s23, %s1288_s22 }
  0x2a   : > { %p38_p4 = scmp.eq.s32.totalorder %s1296_s24, 0  ;;  %p1128_p6 = scmp.lt.s32.totalorder %s1296_s24, 2 }
  0x2b   : > { %s1430_s13 = scalar_select %p28_p1, %s1292_s23, %s30_s10  }
  0x2c   : > { %p39_p8 = por %p38_p4, %p37_p2  ;;  %p1782_p10 = scmp.eq.s32.totalorder %s1361_s25, 1 }
  0x2d   : > { %s223_s8 = sand.u32 1, %s1292_s23   ;;  %s929_s15 = sshll.u32 %s1296_s24, 12 }
  0x2e   : > { %p1434_p12 = por %p1782_p10, %p37_p2  ;;  %s913_s16 = sshll.u32 %s223_s8, 8 }
  0x2f   : > { %s1443_s19 = scalar_lea.hbm %s1768_s0, %s929_s15  ;;  %s227_s7 = scalar_lea.vmem [#allocation2], %s913_s16 }
  0x30   : > { %s234_s10 = sshll.u32 %s227_s7, 4  ;;  %p1445_p11 = pnand %p1128_p6, %p39_p8  ;;  %s1449_s10 = int_to_ptr.vmem [resolvable:$true] %s234_s10 }
  0x31   : > { %s1451_s30 = scalar_lea.sflag [#allocation3], %s223_s8  ;;  %s1196_s12 = scalar_lea.hbm %s1443_s19, 4096 }
  0x32   : > { %p1197_p13 = scmp.ne.s32.totalorder %s1443_s19, %s1196_s12  ;;  %p1198_p0 = pneg %p1445_p11 }
  0x33   : > { %s1201_s17 = scalar_lea.hbm %s1768_s0, 8192  ;;  %p1202_p7 = scmp.lt.u32.totalorder %s1443_s19, %s1768_s0 }
  0x34   : > { %p1199_p3 = pnand %p1198_p0, %p1197_p13  ;;  %p1203_p9 = scmp.lt.u32.totalorder %s1201_s17, %s1196_s12 }
  0x35   : > { %p1205_p2 = scmp.lt.u32.totalorder %s1196_s12, %s1443_s19 }
  0x36   : > { %p1200_p5 = pneg %p1199_p3  ;;  %p1204_p1 = por %p1203_p9, %p1202_p7 }
  0x38   : > { %p1206_p4 = por %p1205_p2, %p1204_p1 }
  0x3a   : > { %p1207_p6 = pnand %p1206_p4, %p1200_p5 }
  0x3c   : > { %1210 = shalt.err (!%p1207_p6)
}
  0x3d   : > { %s1211_s8 = scalar_lea.vmem %s1449_s10, 4096  ;;  %s1301_s15 = smov [#allocation2]  }
  0x3e   : > { %p1212_p8 = scmp.ne.s32.totalorder %s1449_s10, %s1211_s8  ;;  %s1216_s16 = sshll.u32 %s1301_s15, 4  ;;  %s1217_s16 = int_to_ptr.vmem [resolvable:$false] %s1216_s16 }
  0x3f   : > { %s1218_s18 = scalar_lea.vmem %s1217_s16, 8192  ;;  %p1219_p3 = scmp.lt.s32.totalorder %s1449_s10, %s1217_s16 }
  0x40   : > { %p1214_p10 = pnand %p1212_p8, %p1198_p0  ;;  %p1220_p7 = scmp.lt.s32.totalorder %s1218_s18, %s1211_s8 }
  0x42   : > { %p1215_p13 = pneg %p1214_p10  ;;  %p1221_p9 = por %p1220_p7, %p1219_p3 }
  0x44   : > { %p1222_p1 = pnand %p1221_p9, %p1215_p13 }
  0x46   : > { %1225 = shalt.err (!%p1222_p1)
}
  0x47   : > { %1122 = dma.hbm_to_vmem [thread:$0]  (!%p1445_p11), %s1443_s19, 4096, %s1449_s10, %s1451_s30, %s1299_s20, %s1299_s20, %s1300_s26  }
  0x48   : > { %p1785_p0 = scmp.ne.s32.totalorder %s1780_s29, 0 }
  0x49   : > { %s1485_s12 = sand.u32 (!%p1785_p0), 1, %s1288_s22   ;;  %p1786_p5 = scmp.ne.s32.totalorder (!%p1785_p0), %s1778_s27, 0 }
  0x4a   : > { %246 = sbr.rel (%p1785_p0) target bundleno = 382 (0x17e), region = 44  ;;  %s917_s17 = sshll.u32 (!%p1785_p0), %s1485_s12, 8 }
  0x4b   : > { %s249_s7 = scalar_lea.sflag (!%p1785_p0), [#allocation3], %s1485_s12  ;;  %s1491_s11 = scalar_lea.vmem (!%p1785_p0), [#allocation2], %s917_s17 }
  0x51   : > { %1271 = dma.done.wait (%p1786_p5), %s249_s7, 4096  }
  0x52   : > { %1273 = vsyncadd (%p1786_p5), %s249_s7, 4294963200  ;;  %p1787_p11 = scmp.eq.s32.totalorder %s1361_s25, 0 }
  0x54   : > { %1275 = dma.done.wait (%p1787_p11), [#allocation6], 2048   ;;  %p1788_p2 = pmov %p1787_p11 }
  0x55   : > { %v429_v0 = vld [vmem:[#allocation5] sm:$0xff]  ;;  %v430_v1 = vld [vmem:[#allocation5 + $0x8] sm:$0xff]  ;;  %v431_v2 = vld [vmem:[#allocation5 + $0x10] sm:$0xff]  ;;  %s1631_s15 = scalar_lea.vmem [#allocation7], %s917_s17  ;;  %s930_s16 = sshll.u32 %s1361_s25, 12 }
  0x56   : > { %1277 = vsyncadd (%p1788_p2), [#allocation6], 4294965248  ;;  %v1059_v3 = vpack.c.bf16 %v430_v1, %v429_v0  ;;  %v432_v4 = vld [vmem:[#allocation5 + $0x18] sm:$0xff]  ;;  %v433_v6 = vld [vmem:[#allocation5 + $0x20] sm:$0xff]  ;;  %s826_s18 = sshll.u32 %s1631_s15, 4  ;;  %s1718_s7 = scalar_lea.hbm %s1774_s6, %s930_s16  ;;  %s1720_s18 = int_to_ptr.vmem [resolvable:$true] %s826_s18 }
  0x57   : > { %v1063_v5 = vpack.c.bf16 %v432_v4, %v431_v2  ;;  %v434_v7 = vld [vmem:[#allocation5 + $0x28] sm:$0xff]  ;;  %v435_v9 = vld [vmem:[#allocation5 + $0x30] sm:$0xff]  ;;  %v287_v10 = vld [vmem:[%s1491_s11] sm:$0xff]  ;;  %s1226_s27 = scalar_lea.vmem %s1720_s18, 4096  ;;  %s1302_s29 = smov [#allocation7]  }
  0x58   : > { %1060 = vmatprep.subr.bf16.mxu0 %v1059_v3  ;;  %1091 = vmatprep.subr.bf16.mxu1 %v1059_v3  ;;  %v1067_v8 = vpack.c.bf16 %v434_v7, %v433_v6  ;;  %v1505_v11 = vld [vmem:[%s1769_s1] ss:$0 sm:$0xff]  ;;  %v436_v12 = vld [vmem:[#allocation5 + $0x38] sm:$0xff]  ;;  %v438_v21 = vld [vmem:[#allocation5 + $0x48] sm:$0xff]  ;;  %p1227_p4 = scmp.ne.s32.totalorder %s1720_s18, %s1226_s27  ;;  %s1230_s20 = sshll.u32 %s1302_s29, 4  ;;  %s1231_s20 = int_to_ptr.vmem [resolvable:$false] %s1230_s20 }
  0x59   : > { %1062 = vmatpush3.bf16.msra.mxu0 %v1059_v3  ;;  %1099 = vmatpush3.bf16.msra.mxu1 %v1059_v3  ;;  %v326_v13 = vmul.f32 %v1505_v11, %v287_v10  ;;  %v1511_v14 = vld [vmem:[%s1770_s2] ss:$0 sm:$0xff]  ;;  %v1071_v18 = vpack.c.bf16 %v436_v12, %v435_v9  ;;  %v439_v25 = vld [vmem:[#allocation5 + $0x50] sm:$0xff]  ;;  %v440_v26 = vld [vmem:[#allocation5 + $0x58] sm:$0xff]  ;;  %s1232_s26 = scalar_lea.vmem %s1231_s20, 8192  ;;  %p1233_p10 = scmp.lt.s32.totalorder %s1720_s18, %s1231_s20 }
  0x5a   : > { %1064 = vmatprep.subr.bf16.mxu0 %v1063_v5  ;;  %1092 = vmatprep.subr.bf16.mxu1 %v1063_v5  ;;  %v303_v15 = vld [vmem:[%s1491_s11 + $0x80] sm:$0xff]  ;;  %v1079_v27 = vpack.c.bf16 %v440_v26, %v439_v25  ;;  %v442_v29 = vld [vmem:[#allocation5 + $0x68] sm:$0xff]  ;;  %v289_v33 = vld [vmem:[%s1491_s11 + $0x10] sm:$0xff]  ;;  %p1228_p6 = pnand %p1227_p4, %p1434_p12  ;;  %p1234_p13 = scmp.lt.s32.totalorder %s1232_s26, %s1226_s27 }
  0x5b   : > { %v342_v16 = vmul.f32 %v1505_v11, %v303_v15  ;;  %v365_v17 = vadd.f32 %v1511_v14, %v326_v13  ;;  %v437_v20 = vld [vmem:[#allocation5 + $0x40] sm:$0xff]  ;;  %v288_v30 = vld [vmem:[%s1491_s11 + $0x8] sm:$0xff]  ;;  %v305_v34 = vld [vmem:[%s1491_s11 + $0x90] sm:$0xff]  ;;  %v328_v41 = vmul.f32 %v1505_v11, %v289_v33 }
  0x5c   : > { %v1075_v24 = vpack.c.bf16 %v438_v21, %v437_v20  ;;  %v441_v28 = vld [vmem:[#allocation5 + $0x60] sm:$0xff]  ;;  %v304_v31 = vld [vmem:[%s1491_s11 + $0x88] sm:$0xff]  ;;  %v443_v35 = vld [vmem:[#allocation5 + $0x70] sm:$0xff]  ;;  %v327_v37 = vmul.f32 %v1505_v11, %v288_v30  ;;  %v344_v42 = vmul.f32 %v1505_v11, %v305_v34  ;;  %p1229_p8 = pneg %p1228_p6  ;;  %p1235_p3 = por %p1234_p13, %p1233_p10 }
  0x5d   : > { %1066 = vmatpush3.bf16.msra.mxu0 %v1063_v5  ;;  %1100 = vmatpush3.bf16.msra.mxu1 %v1063_v5  ;;  %v381_v19 = vadd.f32 %v1511_v14, %v342_v16  ;;  %v397_v22 = vmax.f32 %v365_v17, 0.0  ;;  %v1083_v32 = vpack.c.bf16 %v442_v29, %v441_v28  ;;  %v444_v36 = vld [vmem:[#allocation5 + $0x78] sm:$0xff]  ;;  %v343_v38 = vmul.f32 %v1505_v11, %v304_v31  ;;  %v291_v43 = vld [vmem:[%s1491_s11 + $0x20] sm:$0xff]  ;;  %v292_v51 = vld [vmem:[%s1491_s11 + $0x28] sm:$0xff] }
  0x5e   : > { %1068 = vmatprep.subr.bf16.mxu0 %v1067_v8  ;;  %1093 = vmatprep.subr.bf16.mxu1 %v1067_v8  ;;  %v290_v39 = vld [vmem:[%s1491_s11 + $0x18] sm:$0xff]  ;;  %v1087_v44 = vpack.c.bf16 %v444_v36, %v443_v35  ;;  %v307_v45 = vld [vmem:[%s1491_s11 + $0xa0] sm:$0xff]  ;;  %v366_v46 = vadd.f32 %v1511_v14, %v327_v37  ;;  %v330_v50 = vmul.f32 %v1505_v11, %v291_v43  ;;  %v308_v55 = vld [vmem:[%s1491_s11 + $0xa8] sm:$0xff]  ;;  %p1236_p7 = pnand %p1235_p3, %p1229_p8 }
  0x5f   : > { %v413_v23 = vmax.f32 %v381_v19, 0.0  ;;  %1011 = vmatprep.mubr.f32.mxu0 %v397_v22  ;;  %v306_v40 = vld [vmem:[%s1491_s11 + $0x98] sm:$0xff]  ;;  %v329_v47 = vmul.f32 %v1505_v11, %v290_v39  ;;  %v382_v49 = vadd.f32 %v1511_v14, %v343_v38  ;;  %v367_v52 = vadd.f32 %v1511_v14, %v328_v41  ;;  %v293_v56 = vld [vmem:[%s1491_s11 + $0x30] sm:$0xff]  ;;  %v311_v9 = vld [vmem:[%s1491_s11 + $0xc0] sm:$0xff] }
  0x60   : > { %v345_v48 = vmul.f32 %v1505_v11, %v306_v40  ;;  %v383_v53 = vadd.f32 %v1511_v14, %v344_v42  ;;  %v346_v54 = vmul.f32 %v1505_v11, %v307_v45  ;;  %v309_v57 = vld [vmem:[%s1491_s11 + $0xb0] sm:$0xff]  ;;  %v398_v58 = vmax.f32 %v366_v46, 0.0  ;;  %v294_v2 = vld [vmem:[%s1491_s11 + $0x38] sm:$0xff]  ;;  %v296_v20 = vld [vmem:[%s1491_s11 + $0x48] sm:$0xff] }
  0x61   : > { %1070 = vmatpush3.bf16.msra.mxu0 %v1067_v8  ;;  %1101 = vmatpush3.bf16.msra.mxu1 %v1067_v8  ;;  %v368_v59 = vadd.f32 %v1511_v14, %v329_v47  ;;  %v331_v61 = vmul.f32 %v1505_v11, %v292_v51  ;;  %v414_v62 = vmax.f32 %v382_v49, 0.0  ;;  %v369_v63 = vadd.f32 %v1511_v14, %v330_v50  ;;  %v310_v7 = vld [vmem:[%s1491_s11 + $0xb8] sm:$0xff]  ;;  %v295_v8 = vld [vmem:[%s1491_s11 + $0x40] sm:$0xff]  ;;  %v312_v21 = vld [vmem:[%s1491_s11 + $0xc8] sm:$0xff] }
  0x62   : > { %1072 = vmatprep.subr.bf16.mxu0 %v1071_v18  ;;  %1094 = vmatprep.subr.bf16.mxu1 %v1071_v18  ;;  %v384_v60 = vadd.f32 %v1511_v14, %v345_v48  ;;  %v347_v0 = vmul.f32 %v1505_v11, %v308_v55  ;;  %v332_v1 = vmul.f32 %v1505_v11, %v293_v56  ;;  %v399_v3 = vmax.f32 %v367_v52, 0.0  ;;  %v297_v26 = vld [vmem:[%s1491_s11 + $0x50] sm:$0xff]  ;;  %v298_v36 = vld [vmem:[%s1491_s11 + $0x58] sm:$0xff]  ;;  %v299_v42 = vld [vmem:[%s1491_s11 + $0x60] sm:$0xff] }
  0x63   : > { %1035 = vmatprep.mubr.f32.mxu1 %v413_v23  ;;  %v415_v4 = vmax.f32 %v383_v53, 0.0  ;;  %v385_v5 = vadd.f32 %v1511_v14, %v346_v54  ;;  %v348_v6 = vmul.f32 %v1505_v11, %v309_v57  ;;  %v400_v10 = vmax.f32 %v368_v59, 0.0  ;;  %v314_v41 = vld [vmem:[%s1491_s11 + $0xd8] sm:$0xff]  ;;  %v315_v43 = vld [vmem:[%s1491_s11 + $0xe0] sm:$0xff]  ;;  %v300_v52 = vld [vmem:[%s1491_s11 + $0x68] sm:$0xff] }
  0x64   : > { %v416_v12 = vmax.f32 %v384_v60, 0.0  ;;  %v370_v13 = vadd.f32 %v1511_v14, %v331_v61  ;;  %v333_v15 = vmul.f32 %v1505_v11, %v294_v2  ;;  %v401_v16 = vmax.f32 %v369_v63, 0.0  ;;  %v316_v57 = vld [vmem:[%s1491_s11 + $0xe8] sm:$0xff]  ;;  %v317_v59 = vld [vmem:[%s1491_s11 + $0xf0] sm:$0xff] }
  0x65   : > { %1074 = vmatpush3.bf16.msra.mxu0 %v1071_v18  ;;  %1102 = vmatpush3.bf16.msra.mxu1 %v1071_v18  ;;  %v386_v17 = vadd.f32 %v1511_v14, %v347_v0  ;;  %v371_v18 = vadd.f32 %v1511_v14, %v332_v1  ;;  %v349_v19 = vmul.f32 %v1505_v11, %v310_v7  ;;  %v417_v22 = vmax.f32 %v385_v5, 0.0 }
  0x66   : > { %1076 = vmatprep.subr.bf16.mxu0 %v1075_v24  ;;  %1095 = vmatprep.subr.bf16.mxu1 %v1075_v24  ;;  %v387_v23 = vadd.f32 %v1511_v14, %v348_v6  ;;  %v350_v25 = vmul.f32 %v1505_v11, %v311_v9  ;;  %v402_v28 = vmax.f32 %v370_v13, 0.0  ;;  %v372_v29 = vadd.f32 %v1511_v14, %v333_v15  ;;  %v318_v9 = vld [vmem:[%s1491_s11 + $0xf8] sm:$0xff] }
  0x67   : > { %v335_v30 = vmul.f32 %v1505_v11, %v296_v20  ;;  %v351_v31 = vmul.f32 %v1505_v11, %v312_v21  ;;  %v403_v33 = vmax.f32 %v371_v18, 0.0  ;;  %v388_v34 = vadd.f32 %v1511_v14, %v349_v19 }
  0x68   : > { %v336_v35 = vmul.f32 %v1505_v11, %v297_v26  ;;  %v419_v37 = vmax.f32 %v387_v23, 0.0  ;;  %v389_v39 = vadd.f32 %v1511_v14, %v350_v25  ;;  %v337_v47 = vmul.f32 %v1505_v11, %v298_v36 }
  0x69   : > { %1078 = vmatpush3.bf16.msra.mxu0 %v1075_v24  ;;  %1103 = vmatpush3.bf16.msra.mxu1 %v1075_v24  ;;  %v334_v24 = vmul.f32 %v1505_v11, %v295_v8  ;;  %v374_v45 = vadd.f32 %v1511_v14, %v335_v30  ;;  %v390_v46 = vadd.f32 %v1511_v14, %v351_v31  ;;  %v420_v48 = vmax.f32 %v388_v34, 0.0  ;;  %v302_v8 = vld [vmem:[%s1491_s11 + $0x78] sm:$0xff] }
  0x6a   : > { %1080 = vmatprep.subr.bf16.mxu0 %v1079_v27  ;;  %1096 = vmatprep.subr.bf16.mxu1 %v1079_v27  ;;  %v375_v49 = vadd.f32 %v1511_v14, %v336_v35  ;;  %v353_v50 = vmul.f32 %v1505_v11, %v314_v41  ;;  %v338_v51 = vmul.f32 %v1505_v11, %v299_v42  ;;  %v421_v54 = vmax.f32 %v389_v39, 0.0 }
  0x6b   : > { %v373_v38 = vadd.f32 %v1511_v14, %v334_v24  ;;  %v354_v56 = vmul.f32 %v1505_v11, %v315_v43  ;;  %v406_v60 = vmax.f32 %v374_v45, 0.0  ;;  %v422_v61 = vmax.f32 %v390_v46, 0.0 }
  0x6c   : > { %v339_v63 = vmul.f32 %v1505_v11, %v300_v52  ;;  %v407_v0 = vmax.f32 %v375_v49, 0.0  ;;  %v392_v1 = vadd.f32 %v1511_v14, %v353_v50  ;;  %v377_v2 = vadd.f32 %v1511_v14, %v338_v51 }
  0x6d   : > { %1082 = vmatpush3.bf16.msra.mxu0 %v1079_v27  ;;  %1104 = vmatpush3.bf16.msra.mxu1 %v1079_v27  ;;  %v313_v27 = vld [vmem:[%s1491_s11 + $0xd0] sm:$0xff]  ;;  %v405_v53 = vmax.f32 %v373_v38, 0.0  ;;  %v393_v5 = vadd.f32 %v1511_v14, %v354_v56  ;;  %v356_v7 = vmul.f32 %v1505_v11, %v317_v59 }
  0x6e   : > { %1084 = vmatprep.subr.bf16.mxu0 %v1083_v32  ;;  %1097 = vmatprep.subr.bf16.mxu1 %v1083_v32  ;;  %v352_v40 = vmul.f32 %v1505_v11, %v313_v27  ;;  %v424_v13 = vmax.f32 %v392_v1, 0.0  ;;  %v409_v18 = vmax.f32 %v377_v2, 0.0 }
  0x6f   : > { %v425_v19 = vmax.f32 %v393_v5, 0.0  ;;  %v395_v21 = vadd.f32 %v1511_v14, %v356_v7 }
  0x70   : > { %v391_v55 = vadd.f32 %v1511_v14, %v352_v40 }
  0x71   : > { %1086 = vmatpush3.bf16.msra.mxu0 %v1083_v32  ;;  %1105 = vmatpush3.bf16.msra.mxu1 %v1083_v32  ;;  %v418_v32 = vmax.f32 %v386_v17, 0.0  ;;  %v357_v17 = vmul.f32 %v1505_v11, %v318_v9 }
  0x72   : > { %1088 = vmatprep.subr.bf16.mxu0 %v1087_v44  ;;  %1098 = vmatprep.subr.bf16.mxu1 %v1087_v44 }
  0x73   : > { %v396_v25 = vadd.f32 %v1511_v14, %v357_v17 }
  0x75   : > { %1090 = vmatpush3.bf16.msra.mxu0 %v1087_v44  ;;  %1106 = vmatpush3.bf16.msra.mxu1 %v1087_v44  ;;  %v404_v44 = vmax.f32 %v372_v29, 0.0  ;;  %v1610_v29 = vld [vmem:[%s1772_s4] ss:$0 sm:$0xff] }
  0x78   : > { %1012 = vmatmul.mubr.f32.vlgmr.msra.gmra.mrb[0].mxu0 %v398_v58  ;;  %1036 = vmatmul.mubr.f32.vlgmr.msra.gmra.mrb[0].mxu1 %v414_v62  ;;  %v301_v58 = vld [vmem:[%s1491_s11 + $0x70] sm:$0xff]  ;;  %v376_v62 = vadd.f32 %v1511_v14, %v337_v47  ;;  %s813_s11 = scalar_lea.sflag [#allocation4], %s1485_s12 }
  0x79   : > { %1014 = vmatprep.mubr.f32.mxu0 %v399_v3  ;;  %1038 = vmatprep.mubr.f32.mxu1 %v415_v4  ;;  %v355_v3 = vmul.f32 %v1505_v11, %v316_v57  ;;  %v423_v4 = vmax.f32 %v391_v55, 0.0  ;;  %v340_v6 = vmul.f32 %v1505_v11, %v301_v58 }
  0x7b   : > { %v394_v15 = vadd.f32 %v1511_v14, %v355_v3  ;;  %v379_v20 = vadd.f32 %v1511_v14, %v340_v6 }
  0x7c   : > { %1015 = vmatmul.mubr.f32.gmra.mrb[2].mxu0 %v400_v10  ;;  %1039 = vmatmul.mubr.f32.gmra.mrb[2].mxu1 %v416_v12  ;;  %v408_v10 = vmax.f32 %v376_v62, 0.0  ;;  %v378_v12 = vadd.f32 %v1511_v14, %v339_v63 }
  0x7d   : > { %1017 = vmatprep.mubr.f32.mxu0 %v401_v16  ;;  %1041 = vmatprep.mubr.f32.mxu1 %v417_v22  ;;  %v341_v16 = vmul.f32 %v1505_v11, %v302_v8  ;;  %v426_v23 = vmax.f32 %v394_v15, 0.0  ;;  %v411_v26 = vmax.f32 %v379_v20, 0.0  ;;  %v427_v11 = vmax.f32 %v395_v21, 0.0 }
  0x7e   : > { %v410_v22 = vmax.f32 %v378_v12, 0.0 }
  0x7f   : > { %v380_v24 = vadd.f32 %v1511_v14, %v341_v16  ;;  %v1615_v14 = vld [vmem:[%s1773_s5] ss:$0 sm:$0xff] }
  0x80   : > { %1018 = vmatmul.mubr.f32.gmra.mrb[4].mxu0 %v402_v28  ;;  %1042 = vmatmul.mubr.f32.gmra.mrb[4].mxu1 %v418_v32  ;;  %v428_v28 = vmax.f32 %v396_v25, 0.0 }
  0x81   : > { %1020 = vmatprep.mubr.f32.mxu0 %v403_v33  ;;  %1044 = vmatprep.mubr.f32.mxu1 %v419_v37  ;;  %v412_v27 = vmax.f32 %v380_v24, 0.0 }
  0x84   : > { %1021 = vmatmul.mubr.f32.gmra.mrb[6].mxu0 %v404_v44  ;;  %1045 = vmatmul.mubr.f32.gmra.mrb[6].mxu1 %v420_v48 }
  0x85   : > { %1023 = vmatprep.mubr.f32.mxu0 %v405_v53  ;;  %1047 = vmatprep.mubr.f32.mxu1 %v421_v54 }
  0x88   : > { %1024 = vmatmul.mubr.f32.gmra.mrb[8].mxu0 %v406_v60  ;;  %1048 = vmatmul.mubr.f32.gmra.mrb[8].mxu1 %v422_v61 }
  0x89   : > { %1026 = vmatprep.mubr.f32.mxu0 %v407_v0  ;;  %1050 = vmatprep.mubr.f32.mxu1 %v423_v4 }
  0x8c   : > { %1027 = vmatmul.mubr.f32.gmra.mrb[10].mxu0 %v408_v10  ;;  %1051 = vmatmul.mubr.f32.gmra.mrb[10].mxu1 %v424_v13 }
  0x8d   : > { %1029 = vmatprep.mubr.f32.mxu0 %v409_v18  ;;  %1053 = vmatprep.mubr.f32.mxu1 %v425_v19 }
  0x90   : > { %1030 = vmatmul.mubr.f32.gmra.mrb[12].mxu0 %v410_v22  ;;  %1054 = vmatmul.mubr.f32.gmra.mrb[12].mxu1 %v426_v23 }
  0x91   : > { %1032 = vmatprep.mubr.f32.mxu0 %v411_v26  ;;  %1056 = vmatprep.mubr.f32.mxu1 %v427_v11 }
  0x94   : > { %1033 = vmatmul.mubr.f32.gmra.mrb[14].mxu0 %v412_v27  ;;  %1057 = vmatmul.mubr.f32.gmra.mrb[14].mxu1 %v428_v28 }
 0x14b   : > { %v1013_v30 = vpop.f32.mrb[0].mxu0  ;;  %v1037_v31 = vpop.f32.mrb[0].mxu1 }
 0x14c   : > { %v678_v32 = vmul.f32 %v1013_v30, %v1610_v29  ;;  %v694_v33 = vmul.f32 %v1037_v31, %v1610_v29  ;;  %v511_v34 = vpop.f32.mrb[1].mxu0  ;;  %v591_v35 = vpop.f32.mrb[1].mxu1 }
 0x14d   : > { %v677_v36 = vmul.f32 %v1610_v29, %v511_v34  ;;  %v693_v37 = vmul.f32 %v1610_v29, %v591_v35 }
 0x14e   : > { %v717_v38 = vadd.f32 %v1615_v14, %v678_v32  ;;  %v733_v39 = vadd.f32 %v1615_v14, %v694_v33 }
 0x14f   : > { %v716_v40 = vadd.f32 %v1615_v14, %v677_v36  ;;  %v732_v41 = vadd.f32 %v1615_v14, %v693_v37  ;;  %v1016_v42 = vpop.f32.mrb[2].mxu0  ;;  %v1040_v43 = vpop.f32.mrb[2].mxu1 }
 0x150   : > { %v749_v44 = vmax.f32 %v717_v38, 0.0  ;;  %v765_v45 = vmax.f32 %v733_v39, 0.0  ;;  %v680_v46 = vmul.f32 %v1016_v42, %v1610_v29  ;;  %v696_v47 = vmul.f32 %v1040_v43, %v1610_v29  ;;  %v521_v48 = vpop.f32.mrb[3].mxu0  ;;  %v601_v49 = vpop.f32.mrb[3].mxu1 }
 0x151   : > { %v748_v50 = vmax.f32 %v716_v40, 0.0  ;;  %v764_v51 = vmax.f32 %v732_v41, 0.0  ;;  %v679_v52 = vmul.f32 %v1610_v29, %v521_v48  ;;  %v695_v53 = vmul.f32 %v1610_v29, %v601_v49 }
 0x152   : > { %781 = vst [vmem:[%s1631_s15 + $0x8] sm:$0xff] %v749_v44  ;;  %797 = vst [vmem:[%s1631_s15 + $0x88] sm:$0xff] %v765_v45  ;;  %v719_v54 = vadd.f32 %v1615_v14, %v680_v46  ;;  %v735_v55 = vadd.f32 %v1615_v14, %v696_v47 }
 0x153   : > { %780 = vst [vmem:[%s1631_s15] sm:$0xff] %v748_v50  ;;  %796 = vst [vmem:[%s1631_s15 + $0x80] sm:$0xff] %v764_v51  ;;  %v718_v56 = vadd.f32 %v1615_v14, %v679_v52  ;;  %v734_v57 = vadd.f32 %v1615_v14, %v695_v53  ;;  %v1019_v58 = vpop.f32.mrb[4].mxu0  ;;  %v1043_v59 = vpop.f32.mrb[4].mxu1 }
 0x154   : > { %v751_v60 = vmax.f32 %v719_v54, 0.0  ;;  %v767_v61 = vmax.f32 %v735_v55, 0.0  ;;  %v682_v62 = vmul.f32 %v1019_v58, %v1610_v29  ;;  %v698_v63 = vmul.f32 %v1043_v59, %v1610_v29  ;;  %v531_v0 = vpop.f32.mrb[5].mxu0  ;;  %v611_v1 = vpop.f32.mrb[5].mxu1 }
 0x155   : > { %v750_v2 = vmax.f32 %v718_v56, 0.0  ;;  %v766_v3 = vmax.f32 %v734_v57, 0.0  ;;  %v681_v4 = vmul.f32 %v1610_v29, %v531_v0  ;;  %v697_v5 = vmul.f32 %v1610_v29, %v611_v1 }
 0x156   : > { %783 = vst [vmem:[%s1631_s15 + $0x18] sm:$0xff] %v751_v60  ;;  %799 = vst [vmem:[%s1631_s15 + $0x98] sm:$0xff] %v767_v61  ;;  %v721_v6 = vadd.f32 %v1615_v14, %v682_v62  ;;  %v737_v7 = vadd.f32 %v1615_v14, %v698_v63 }
 0x157   : > { %782 = vst [vmem:[%s1631_s15 + $0x10] sm:$0xff] %v750_v2  ;;  %798 = vst [vmem:[%s1631_s15 + $0x90] sm:$0xff] %v766_v3  ;;  %v720_v8 = vadd.f32 %v1615_v14, %v681_v4  ;;  %v736_v9 = vadd.f32 %v1615_v14, %v697_v5  ;;  %v1022_v10 = vpop.f32.mrb[6].mxu0  ;;  %v1046_v12 = vpop.f32.mrb[6].mxu1 }
 0x158   : > { %v753_v13 = vmax.f32 %v721_v6, 0.0  ;;  %v769_v15 = vmax.f32 %v737_v7, 0.0  ;;  %v684_v16 = vmul.f32 %v1022_v10, %v1610_v29  ;;  %v700_v17 = vmul.f32 %v1046_v12, %v1610_v29  ;;  %v541_v18 = vpop.f32.mrb[7].mxu0  ;;  %v621_v19 = vpop.f32.mrb[7].mxu1 }
 0x159   : > { %v752_v20 = vmax.f32 %v720_v8, 0.0  ;;  %v768_v21 = vmax.f32 %v736_v9, 0.0  ;;  %v683_v22 = vmul.f32 %v1610_v29, %v541_v18  ;;  %v699_v23 = vmul.f32 %v1610_v29, %v621_v19 }
 0x15a   : > { %785 = vst [vmem:[%s1631_s15 + $0x28] sm:$0xff] %v753_v13  ;;  %801 = vst [vmem:[%s1631_s15 + $0xa8] sm:$0xff] %v769_v15  ;;  %v723_v24 = vadd.f32 %v1615_v14, %v684_v16  ;;  %v739_v25 = vadd.f32 %v1615_v14, %v700_v17 }
 0x15b   : > { %784 = vst [vmem:[%s1631_s15 + $0x20] sm:$0xff] %v752_v20  ;;  %800 = vst [vmem:[%s1631_s15 + $0xa0] sm:$0xff] %v768_v21  ;;  %v722_v26 = vadd.f32 %v1615_v14, %v683_v22  ;;  %v738_v11 = vadd.f32 %v1615_v14, %v699_v23  ;;  %v1025_v27 = vpop.f32.mrb[8].mxu0  ;;  %v1049_v28 = vpop.f32.mrb[8].mxu1 }
 0x15c   : > { %v755_v30 = vmax.f32 %v723_v24, 0.0  ;;  %v771_v31 = vmax.f32 %v739_v25, 0.0  ;;  %v686_v32 = vmul.f32 %v1025_v27, %v1610_v29  ;;  %v702_v33 = vmul.f32 %v1049_v28, %v1610_v29  ;;  %v551_v34 = vpop.f32.mrb[9].mxu0  ;;  %v631_v35 = vpop.f32.mrb[9].mxu1 }
 0x15d   : > { %v754_v36 = vmax.f32 %v722_v26, 0.0  ;;  %v770_v37 = vmax.f32 %v738_v11, 0.0  ;;  %v685_v38 = vmul.f32 %v1610_v29, %v551_v34  ;;  %v701_v39 = vmul.f32 %v1610_v29, %v631_v35 }
 0x15e   : > { %787 = vst [vmem:[%s1631_s15 + $0x38] sm:$0xff] %v755_v30  ;;  %803 = vst [vmem:[%s1631_s15 + $0xb8] sm:$0xff] %v771_v31  ;;  %v725_v40 = vadd.f32 %v1615_v14, %v686_v32  ;;  %v741_v41 = vadd.f32 %v1615_v14, %v702_v33 }
 0x15f   : > { %786 = vst [vmem:[%s1631_s15 + $0x30] sm:$0xff] %v754_v36  ;;  %802 = vst [vmem:[%s1631_s15 + $0xb0] sm:$0xff] %v770_v37  ;;  %v724_v42 = vadd.f32 %v1615_v14, %v685_v38  ;;  %v740_v43 = vadd.f32 %v1615_v14, %v701_v39  ;;  %v1028_v44 = vpop.f32.mrb[10].mxu0  ;;  %v1052_v45 = vpop.f32.mrb[10].mxu1 }
 0x160   : > { %v757_v46 = vmax.f32 %v725_v40, 0.0  ;;  %v773_v47 = vmax.f32 %v741_v41, 0.0  ;;  %v688_v48 = vmul.f32 %v1028_v44, %v1610_v29  ;;  %v704_v49 = vmul.f32 %v1052_v45, %v1610_v29  ;;  %v561_v50 = vpop.f32.mrb[11].mxu0  ;;  %v641_v51 = vpop.f32.mrb[11].mxu1 }
 0x161   : > { %v756_v52 = vmax.f32 %v724_v42, 0.0  ;;  %v772_v53 = vmax.f32 %v740_v43, 0.0  ;;  %v687_v54 = vmul.f32 %v1610_v29, %v561_v50  ;;  %v703_v55 = vmul.f32 %v1610_v29, %v641_v51 }
 0x162   : > { %789 = vst [vmem:[%s1631_s15 + $0x48] sm:$0xff] %v757_v46  ;;  %805 = vst [vmem:[%s1631_s15 + $0xc8] sm:$0xff] %v773_v47  ;;  %v727_v56 = vadd.f32 %v1615_v14, %v688_v48  ;;  %v743_v57 = vadd.f32 %v1615_v14, %v704_v49 }
 0x163   : > { %788 = vst [vmem:[%s1631_s15 + $0x40] sm:$0xff] %v756_v52  ;;  %804 = vst [vmem:[%s1631_s15 + $0xc0] sm:$0xff] %v772_v53  ;;  %v726_v58 = vadd.f32 %v1615_v14, %v687_v54  ;;  %v742_v59 = vadd.f32 %v1615_v14, %v703_v55  ;;  %v1031_v60 = vpop.f32.mrb[12].mxu0  ;;  %v1055_v61 = vpop.f32.mrb[12].mxu1 }
 0x164   : > { %v759_v62 = vmax.f32 %v727_v56, 0.0  ;;  %v775_v63 = vmax.f32 %v743_v57, 0.0  ;;  %v690_v0 = vmul.f32 %v1031_v60, %v1610_v29  ;;  %v706_v1 = vmul.f32 %v1055_v61, %v1610_v29  ;;  %v571_v2 = vpop.f32.mrb[13].mxu0  ;;  %v651_v3 = vpop.f32.mrb[13].mxu1 }
 0x165   : > { %v758_v4 = vmax.f32 %v726_v58, 0.0  ;;  %v774_v5 = vmax.f32 %v742_v59, 0.0  ;;  %v689_v6 = vmul.f32 %v1610_v29, %v571_v2  ;;  %v705_v7 = vmul.f32 %v1610_v29, %v651_v3 }
 0x166   : > { %791 = vst [vmem:[%s1631_s15 + $0x58] sm:$0xff] %v759_v62  ;;  %807 = vst [vmem:[%s1631_s15 + $0xd8] sm:$0xff] %v775_v63  ;;  %v729_v8 = vadd.f32 %v1615_v14, %v690_v0  ;;  %v745_v9 = vadd.f32 %v1615_v14, %v706_v1 }
 0x167   : > { %790 = vst [vmem:[%s1631_s15 + $0x50] sm:$0xff] %v758_v4  ;;  %806 = vst [vmem:[%s1631_s15 + $0xd0] sm:$0xff] %v774_v5  ;;  %v728_v10 = vadd.f32 %v1615_v14, %v689_v6  ;;  %v744_v12 = vadd.f32 %v1615_v14, %v705_v7  ;;  %v1034_v13 = vpop.f32.mrb[14].mxu0  ;;  %v1058_v15 = vpop.f32.mrb[14].mxu1 }
 0x168   : > { %v761_v16 = vmax.f32 %v729_v8, 0.0  ;;  %v777_v17 = vmax.f32 %v745_v9, 0.0  ;;  %v692_v18 = vmul.f32 %v1034_v13, %v1610_v29  ;;  %v708_v19 = vmul.f32 %v1058_v15, %v1610_v29  ;;  %v581_v20 = vpop.f32.mrb[15].mxu0  ;;  %v661_v21 = vpop.f32.mrb[15].mxu1 }
 0x169   : > { %v760_v22 = vmax.f32 %v728_v10, 0.0  ;;  %v776_v23 = vmax.f32 %v744_v12, 0.0  ;;  %v691_v24 = vmul.f32 %v1610_v29, %v581_v20  ;;  %v707_v25 = vmul.f32 %v1610_v29, %v661_v21 }
 0x16a   : > { %793 = vst [vmem:[%s1631_s15 + $0x68] sm:$0xff] %v761_v16  ;;  %809 = vst [vmem:[%s1631_s15 + $0xe8] sm:$0xff] %v777_v17  ;;  %v731_v26 = vadd.f32 %v1615_v14, %v692_v18  ;;  %v747_v11 = vadd.f32 %v1615_v14, %v708_v19 }
 0x16b   : > { %792 = vst [vmem:[%s1631_s15 + $0x60] sm:$0xff] %v760_v22  ;;  %808 = vst [vmem:[%s1631_s15 + $0xe0] sm:$0xff] %v776_v23  ;;  %v730_v27 = vadd.f32 %v1615_v14, %v691_v24  ;;  %v746_v29 = vadd.f32 %v1615_v14, %v707_v25 }
 0x16c   : > { %v763_v28 = vmax.f32 %v731_v26, 0.0  ;;  %v779_v30 = vmax.f32 %v747_v11, 0.0 }
 0x16d   : > { %v762_v31 = vmax.f32 %v730_v27, 0.0  ;;  %v778_v32 = vmax.f32 %v746_v29, 0.0 }
 0x16e   : > { %795 = vst [vmem:[%s1631_s15 + $0x78] sm:$0xff] %v763_v28  ;;  %811 = vst [vmem:[%s1631_s15 + $0xf8] sm:$0xff] %v779_v30 }
 0x16f   : > { %794 = vst [vmem:[%s1631_s15 + $0x70] sm:$0xff] %v762_v31  ;;  %810 = vst [vmem:[%s1631_s15 + $0xf0] sm:$0xff] %v778_v32 }
 0x170   : > { %1239 = shalt.err (!%p1236_p7)
}
 0x171   : > { %s1240_s19 = scalar_lea.hbm %s1718_s7, 4096  ;;  %s1244_s8 = scalar_lea.hbm %s1774_s6, 8192 }
 0x172   : > { %p1241_p9 = scmp.ne.s32.totalorder %s1718_s7, %s1240_s19  ;;  %p1245_p5 = scmp.lt.u32.totalorder %s1718_s7, %s1774_s6 }
 0x173   : > { %p1246_p11 = scmp.lt.u32.totalorder %s1244_s8, %s1240_s19  ;;  %p1248_p4 = scmp.lt.u32.totalorder %s1240_s19, %s1718_s7 }
 0x174   : > { %p1242_p1 = pnand %p1241_p9, %p1434_p12 }
 0x175   : > { %p1247_p2 = por %p1246_p11, %p1245_p5 }
 0x176   : > { %p1243_p0 = pneg %p1242_p1 }
 0x177   : > { %p1249_p6 = por %p1248_p4, %p1247_p2 }
 0x179   : > { %p1250_p8 = pnand %p1249_p6, %p1243_p0 }
 0x17b   : > { %1253 = shalt.err (!%p1250_p8)
}
 0x17c   : > { %s1303_s25 = smov 128   ;;  %s1304_s17 = smov 8  }
 0x17d   : > { %1113 = dma.vmem_to_hbm [thread:$0]  (%p1434_p12), %s1720_s18, 4096, %s1718_s7, %s813_s11, %s1303_s25, %s1303_s25, %s1304_s17  }
 0x17e PF: > { %s841_s27 = sand.u32 1, %s1284_s21   ;;  %p1789_p10 = scmp.ne.s32.totalorder %s1779_s28, 0 }
 0x17f   : > { %p1790_p13 = scmp.ge.s32.totalorder %s1296_s24, 2  ;;  %s842_s29 = scalar_lea.sflag [#allocation4], %s841_s27 }
 0x181   : > { %p1124_p3 = pnand %p1790_p13, %p1789_p10 }
 0x183   : > { %1279 = dma.done.wait (!%p1124_p3), %s842_s29, 4096  }
 0x184   : > { %1281 = vsyncadd (!%p1124_p3), %s842_s29, 4294963200  ;;  %p20_p7 = scmp.ge.s32.totalorder %s1396_s9, 4   ;;  %s1791_s21 = smov %s1288_s22 }
 0x185   : > { %s1792_s22 = smov %s1292_s23  ;;  %s1793_s23 = smov %s1430_s13 }
 0x186   : > { %s1794_s24 = smov %s1396_s9  ;;  %22 = sbr.rel (!%p20_p7) target bundleno = 6 (0x6), region = 93 }
 0x18d   :  { %847 = vsyncpa [#allocation3], 1 }
 0x18e   :  { %849 = vsyncpa [#allocation3 + $0x1], 1 }
 0x18f   :  { %850 = vsyncpa [#allocation6], 1 }
 0x190   :  { %851 = vsyncpa [#allocation4], 1 }
 0x191   :  { %853 = vsyncpa [#allocation4 + $0x1], 1 }

</bundles_post_ra>
